<compile_context>
chip_gen: v7x
topology: tpu7x:2x2x1
jax: 0.10.0
libtpu: 0.0.40
codegen_flags: <defaults>
</compile_context>

<pallas_src>
import jax
import jax.numpy as jnp
from jax.experimental import pallas as pl
from jax.experimental.pallas import tpu as pltpu


_SQRT1_2 = 0.7071067811865476  # 1 / sqrt(2)


def _round_up(x: int, m: int) -> int:
    return ((x + m - 1) // m) * m


def _cdiv(a: int, b: int) -> int:
    return (a + b - 1) // b


def _classification_head_kernel(x_ref, w1_ref, b1_ref, w2_ref, b2_ref, o_ref):
    # Cast the f32 activation tile to bf16 on the VPU (hidden under MXU time) instead of
    # doing a standalone cast pass in the wrapper.
    x_bf = x_ref[...].astype(jnp.bfloat16)

    # dense: [TB, H] bf16 @ [H, H] bf16 -> f32 accumulate; bias folded into the init.
    h = b1_ref[...] + jnp.dot(x_bf, w1_ref[...], preferred_element_type=jnp.float32)

    # exact erf-based GELU (matches torch.nn.GELU default); kept in f32 so it is correct
    # and fast on all generations (v5e has no bf16 VPU/EUP path).
    h = 0.5 * h * (1.0 + jax.lax.erf(h * _SQRT1_2))

    # dropout: identity at inference.
    # TODO(synk): training-mode dropout (stateful PRNG mask) not implemented.

    # classifier: [TB, H] bf16 @ [H, LP] bf16 -> f32 accumulate; LP is lane-dense (x128).
    logits = b2_ref[...] + jnp.dot(
        h.astype(w2_ref.dtype), w2_ref[...], preferred_element_type=jnp.float32
    )
    o_ref[...] = logits.astype(o_ref.dtype)


def prepare_classification_head_params(w_dense, b_dense, w_cls, b_cls):
    """One-time (model-load) parameter preparation.

    Casts matmul weights to bf16 and zero-pads the label dim to a multiple of 128 so the
    per-call path does not re-stream any parameter casts/pads through HBM."""
    H, L = w_cls.shape
    LP = _round_up(L, 128)

    w1_bf = w_dense.astype(jnp.bfloat16)
    b1 = jnp.reshape(b_dense, (1, -1)).astype(jnp.float32)

    w2 = w_cls
    b2 = jnp.reshape(b_cls, (1, -1)).astype(jnp.float32)
    if LP != L:
        w2 = jnp.pad(w2, ((0, 0), (0, LP - L)))
        b2 = jnp.pad(b2, ((0, 0), (0, LP - L)))
    w2_bf = w2.astype(jnp.bfloat16)

    return {"w1": w1_bf, "b1": b1, "w2": w2_bf, "b2": b2,
            "hidden": H, "num_labels": L, "padded_labels": LP}


def _choose_batch_tile(B: int, block_b: int) -> int:
    """Balanced batch tiles, multiple of 16, and >= 2 (even count) tiles for batches
    large enough to split -> both v7x TensorCores get work and tiles stay balanced."""
    if B < 32:
        return _round_up(B, 8)
    n = max(_cdiv(B, block_b), 2)
    if n % 2:
        n += 1
    return _round_up(_cdiv(B, n), 16)


def _build_head_call(B, H, LP, TB, resident_mode):
    def const_spec(shape):
        if resident_mode is None:
            return pl.BlockSpec(shape, lambda i: (0, 0))
        return pl.BlockSpec(shape, lambda i: (0, 0), pipeline_mode=resident_mode)

    return pl.pallas_call(
        _classification_head_kernel,
        out_shape=jax.ShapeDtypeStruct((B, LP), jnp.float32),
        grid=(_cdiv(B, TB),),  # last block may be partial; Pallas masks ragged rows
        in_specs=[
            pl.BlockSpec((TB, H), lambda i: (i, 0)),  # x: streamed f32 batch tile
            const_spec((H, H)),                        # W_dense: VMEM-resident
            const_spec((1, H)),                        # b_dense
            const_spec((H, LP)),                       # W_cls (lane-padded)
            const_spec((1, LP)),                       # b_cls (lane-padded)
        ],
        out_specs=pl.BlockSpec((TB, LP), lambda i: (i, 0)),
        compiler_params=pltpu.CompilerParams(
            # independent batch tiles -> shard across both TensorCores on v7x
            dimension_semantics=("parallel",),
            vmem_limit_bytes=40 * 1024 * 1024,
        ),
    )


def biobert_classification_head(x, params, *, block_b=1024):
    """x: [B, H] float32, params: output of prepare_classification_head_params.
    Returns [B, num_labels] float32 logits (inference-mode forward pass)."""
    B, H = x.shape
    assert H == params["hidden"]
    L = params["num_labels"]
    LP = params["padded_labels"]

    TB = _choose_batch_tile(B, block_b)
    x_f32 = x.astype(jnp.float32)
    args = (x_f32, params["w1"], params["b1"], params["w2"], params["b2"])

    try:
        # Constant-index weights/biases single-buffered: saves VMEM (matters on v7x).
        out = _build_head_call(B, H, LP, TB, pl.Buffered(1))(*args)
    except Exception:
        # Fallback: default double-buffering (still no re-DMA for constant block index).
        out = _build_head_call(B, H, LP, TB, None)(*args)

    return out if LP == L else out[:, :L]


if __name__ == "__main__":
    # Small shapes consistent with the module: [batch, hidden] -> [batch, num_labels]
    batch, hidden, num_labels = 8, 128, 8

    key = jax.random.PRNGKey(0)
    kx, kw1, kb1, kw2, kb2 = jax.random.split(key, 5)

    x = jax.random.normal(kx, (batch, hidden), dtype=jnp.float32)

    # Deterministic synthetic parameters (not a checkpoint load).
    scale = 1.0 / jnp.sqrt(jnp.float32(hidden))
    w_dense = jax.random.uniform(kw1, (hidden, hidden), jnp.float32, -scale, scale)
    b_dense = jax.random.uniform(kb1, (hidden,), jnp.float32, -scale, scale)
    w_cls = jax.random.uniform(kw2, (hidden, num_labels), jnp.float32, -scale, scale)
    b_cls = jax.random.uniform(kb2, (num_labels,), jnp.float32, -scale, scale)

    # One-time parameter prep (model-load path), then the per-call kernel.
    params = prepare_classification_head_params(w_dense, b_dense, w_cls, b_cls)
    logits = biobert_classification_head(x, params)
    logits = jax.block_until_ready(logits)

    # Pure-JAX f32 reference (kernel matmuls run in bf16 -> loose tolerance).
    h_ref = x @ w_dense + b_dense[None, :]
    h_ref = 0.5 * h_ref * (1.0 + jax.lax.erf(h_ref * _SQRT1_2))
    ref = h_ref @ w_cls + b_cls[None, :]

    assert logits.shape == (batch, num_labels)
    assert jnp.allclose(logits, ref, atol=5e-2, rtol=5e-2), float(
        jnp.max(jnp.abs(logits - ref))
    )
    print("KERNEL_OK")
</pallas_src>

<mosaic_0001>
module attributes {stable_mosaic.version = 11 : i64} {
  func.func @_classification_head_kernel(%arg0: i32, %arg1: memref<8x128xf32, #tpu.memory_space<vmem>>, %arg2: memref<128x128xbf16, #tpu.memory_space<vmem>>, %arg3: memref<1x128xf32, #tpu.memory_space<vmem>>, %arg4: memref<128x128xbf16, #tpu.memory_space<vmem>>, %arg5: memref<1x128xf32, #tpu.memory_space<vmem>>, %arg6: memref<8x128xf32, #tpu.memory_space<vmem>>) attributes {dimension_semantics = [#tpu.dimension_semantics<parallel>], iteration_bounds = array<i64: 1>, scalar_prefetch = 0 : i64, scratch_operands = 0 : i64, tpu.core_type = #tpu.core_type<tc>, window_params = [{transform_indices = @transform_0, window_bounds = array<i64: 8, 128>}, {pipeline_mode = #tpu.pipeline_mode<synchronous>, transform_indices = @transform_1, window_bounds = array<i64: 128, 128>}, {pipeline_mode = #tpu.pipeline_mode<synchronous>, transform_indices = @transform_2, window_bounds = array<i64: 1, 128>}, {pipeline_mode = #tpu.pipeline_mode<synchronous>, transform_indices = @transform_3, window_bounds = array<i64: 128, 128>}, {pipeline_mode = #tpu.pipeline_mode<synchronous>, transform_indices = @transform_4, window_bounds = array<i64: 1, 128>}, {transform_indices = @transform_5, window_bounds = array<i64: 8, 128>}]} {
    %c0 = arith.constant 0 : index
    %c0_0 = arith.constant 0 : index
    %0 = vector.load %arg1[%c0, %c0_0] : memref<8x128xf32, #tpu.memory_space<vmem>>, vector<8x128xf32>
    %1 = arith.truncf %0 : vector<8x128xf32> to vector<8x128xbf16>
    %c0_1 = arith.constant 0 : index
    %c0_2 = arith.constant 0 : index
    %2 = vector.load %arg3[%c0_1, %c0_2] : memref<1x128xf32, #tpu.memory_space<vmem>>, vector<1x128xf32>
    %c0_3 = arith.constant 0 : index
    %c0_4 = arith.constant 0 : index
    %3 = vector.load %arg2[%c0_3, %c0_4] : memref<128x128xbf16, #tpu.memory_space<vmem>>, vector<128x128xbf16>
    %cst = arith.constant dense<0.000000e+00> : vector<8x128xf32>
    %4 = tpu.matmul %1, %3, %cst {dimension_numbers = #tpu.dot_dimension_numbers<[1], [0], [0], [1], [0, 0, 1, 1], [], []>} : vector<8x128xbf16>, vector<128x128xbf16>, vector<8x128xf32> -> vector<8x128xf32>
    %5 = vector.broadcast %2 : vector<1x128xf32> to vector<8x128xf32>
    %6 = arith.addf %5, %4 : vector<8x128xf32>
    %cst_5 = arith.constant 5.000000e-01 : f32
    %7 = vector.broadcast %cst_5 : f32 to vector<8x128xf32>
    %8 = arith.mulf %7, %6 : vector<8x128xf32>
    %cst_6 = arith.constant 0.707106769 : f32
    %9 = vector.broadcast %cst_6 : f32 to vector<8x128xf32>
    %10 = arith.mulf %6, %9 : vector<8x128xf32>
    %11 = math.erf %10 : vector<8x128xf32>
    %cst_7 = arith.constant 1.000000e+00 : f32
    %12 = vector.broadcast %cst_7 : f32 to vector<8x128xf32>
    %13 = arith.addf %12, %11 : vector<8x128xf32>
    %14 = arith.mulf %8, %13 : vector<8x128xf32>
    %c0_8 = arith.constant 0 : index
    %c0_9 = arith.constant 0 : index
    %15 = vector.load %arg5[%c0_8, %c0_9] : memref<1x128xf32, #tpu.memory_space<vmem>>, vector<1x128xf32>
    %16 = arith.truncf %14 : vector<8x128xf32> to vector<8x128xbf16>
    %c0_10 = arith.constant 0 : index
    %c0_11 = arith.constant 0 : index
    %17 = vector.load %arg4[%c0_10, %c0_11] : memref<128x128xbf16, #tpu.memory_space<vmem>>, vector<128x128xbf16>
    %cst_12 = arith.constant dense<0.000000e+00> : vector<8x128xf32>
    %18 = tpu.matmul %16, %17, %cst_12 {dimension_numbers = #tpu.dot_dimension_numbers<[1], [0], [0], [1], [0, 0, 1, 1], [], []>} : vector<8x128xbf16>, vector<128x128xbf16>, vector<8x128xf32> -> vector<8x128xf32>
    %19 = vector.broadcast %15 : vector<1x128xf32> to vector<8x128xf32>
    %20 = arith.addf %19, %18 : vector<8x128xf32>
    %c0_13 = arith.constant 0 : index
    %c0_14 = arith.constant 0 : index
    %21 = vector.load %arg6[%c0_13, %c0_14] : memref<8x128xf32, #tpu.memory_space<vmem>>, vector<8x128xf32>
    tpu.vector_store %arg6[%c0_13, %c0_14], %20 {strides = array<i32>} : memref<8x128xf32, #tpu.memory_space<vmem>>, vector<8x128xf32>,
    return
  }
  func.func @transform_0(%arg0: i32) -> (i32, i32) {
    %c0_i32 = arith.constant 0 : i32
    %c0_i32_0 = arith.constant 0 : i32
    return %arg0, %c0_i32 : i32, i32
  }
  func.func @transform_1(%arg0: i32) -> (i32, i32) {
    %c0_i32 = arith.constant 0 : i32
    %c0_i32_0 = arith.constant 0 : i32
    %c0_i32_1 = arith.constant 0 : i32
    return %c0_i32, %c0_i32_0 : i32, i32
  }
  func.func @transform_2(%arg0: i32) -> (i32, i32) {
    %c0_i32 = arith.constant 0 : i32
    %c0_i32_0 = arith.constant 0 : i32
    %c0_i32_1 = arith.constant 0 : i32
    return %c0_i32, %c0_i32_0 : i32, i32
  }
  func.func @transform_3(%arg0: i32) -> (i32, i32) {
    %c0_i32 = arith.constant 0 : i32
    %c0_i32_0 = arith.constant 0 : i32
    %c0_i32_1 = arith.constant 0 : i32
    return %c0_i32, %c0_i32_0 : i32, i32
  }
  func.func @transform_4(%arg0: i32) -> (i32, i32) {
    %c0_i32 = arith.constant 0 : i32
    %c0_i32_0 = arith.constant 0 : i32
    %c0_i32_1 = arith.constant 0 : i32
    return %c0_i32, %c0_i32_0 : i32, i32
  }
  func.func @transform_5(%arg0: i32) -> (i32, i32) {
    %c0_i32 = arith.constant 0 : i32
    %c0_i32_0 = arith.constant 0 : i32
    return %arg0, %c0_i32 : i32, i32
  }
}

module attributes {stable_mosaic.version = 11 : i64} {
  func.func @_classification_head_kernel(%arg0: i32, %arg1: memref<8x128xf32, #tpu.memory_space<vmem>>, %arg2: memref<128x128xbf16, #tpu.memory_space<vmem>>, %arg3: memref<1x128xf32, #tpu.memory_space<vmem>>, %arg4: memref<128x128xbf16, #tpu.memory_space<vmem>>, %arg5: memref<1x128xf32, #tpu.memory_space<vmem>>, %arg6: memref<8x128xf32, #tpu.memory_space<vmem>>) attributes {dimension_semantics = [#tpu.dimension_semantics<parallel>], iteration_bounds = array<i64: 1>, scalar_prefetch = 0 : i64, scratch_operands = 0 : i64, tpu.core_type = #tpu.core_type<tc>, window_params = [{transform_indices = @transform_0, window_bounds = array<i64: 8, 128>}, {pipeline_mode = #tpu.pipeline_mode<synchronous>, transform_indices = @transform_1, window_bounds = array<i64: 128, 128>}, {pipeline_mode = #tpu.pipeline_mode<synchronous>, transform_indices = @transform_2, window_bounds = array<i64: 1, 128>}, {pipeline_mode = #tpu.pipeline_mode<synchronous>, transform_indices = @transform_3, window_bounds = array<i64: 128, 128>}, {pipeline_mode = #tpu.pipeline_mode<synchronous>, transform_indices = @transform_4, window_bounds = array<i64: 1, 128>}, {transform_indices = @transform_5, window_bounds = array<i64: 8, 128>}]} {
    %c0 = arith.constant 0 : index
    %c0_0 = arith.constant 0 : index
    %0 = vector.load %arg1[%c0, %c0_0] : memref<8x128xf32, #tpu.memory_space<vmem>>, vector<8x128xf32>
    %1 = arith.truncf %0 : vector<8x128xf32> to vector<8x128xbf16>
    %c0_1 = arith.constant 0 : index
    %c0_2 = arith.constant 0 : index
    %2 = vector.load %arg3[%c0_1, %c0_2] : memref<1x128xf32, #tpu.memory_space<vmem>>, vector<1x128xf32>
    %c0_3 = arith.constant 0 : index
    %c0_4 = arith.constant 0 : index
    %3 = vector.load %arg2[%c0_3, %c0_4] : memref<128x128xbf16, #tpu.memory_space<vmem>>, vector<128x128xbf16>
    %cst = arith.constant dense<0.000000e+00> : vector<8x128xf32>
    %4 = tpu.matmul %1, %3, %cst {dimension_numbers = #tpu.dot_dimension_numbers<[1], [0], [0], [1], [0, 0, 1, 1], [], []>} : vector<8x128xbf16>, vector<128x128xbf16>, vector<8x128xf32> -> vector<8x128xf32>
    %5 = vector.broadcast %2 : vector<1x128xf32> to vector<8x128xf32>
    %6 = arith.addf %5, %4 : vector<8x128xf32>
    %cst_5 = arith.constant 5.000000e-01 : f32
    %7 = vector.broadcast %cst_5 : f32 to vector<8x128xf32>
    %8 = arith.mulf %7, %6 : vector<8x128xf32>
    %cst_6 = arith.constant 0.707106769 : f32
    %9 = vector.broadcast %cst_6 : f32 to vector<8x128xf32>
    %10 = arith.mulf %6, %9 : vector<8x128xf32>
    %11 = math.erf %10 : vector<8x128xf32>
    %cst_7 = arith.constant 1.000000e+00 : f32
    %12 = vector.broadcast %cst_7 : f32 to vector<8x128xf32>
    %13 = arith.addf %12, %11 : vector<8x128xf32>
    %14 = arith.mulf %8, %13 : vector<8x128xf32>
    %c0_8 = arith.constant 0 : index
    %c0_9 = arith.constant 0 : index
    %15 = vector.load %arg5[%c0_8, %c0_9] : memref<1x128xf32, #tpu.memory_space<vmem>>, vector<1x128xf32>
    %16 = arith.truncf %14 : vector<8x128xf32> to vector<8x128xbf16>
    %c0_10 = arith.constant 0 : index
    %c0_11 = arith.constant 0 : index
    %17 = vector.load %arg4[%c0_10, %c0_11] : memref<128x128xbf16, #tpu.memory_space<vmem>>, vector<128x128xbf16>
    %cst_12 = arith.constant dense<0.000000e+00> : vector<8x128xf32>
    %18 = tpu.matmul %16, %17, %cst_12 {dimension_numbers = #tpu.dot_dimension_numbers<[1], [0], [0], [1], [0, 0, 1, 1], [], []>} : vector<8x128xbf16>, vector<128x128xbf16>, vector<8x128xf32> -> vector<8x128xf32>
    %19 = vector.broadcast %15 : vector<1x128xf32> to vector<8x128xf32>
    %20 = arith.addf %19, %18 : vector<8x128xf32>
    %c0_13 = arith.constant 0 : index
    %c0_14 = arith.constant 0 : index
    %21 = vector.load %arg6[%c0_13, %c0_14] : memref<8x128xf32, #tpu.memory_space<vmem>>, vector<8x128xf32>
    tpu.vector_store %arg6[%c0_13, %c0_14], %20 {strides = array<i32>} : memref<8x128xf32, #tpu.memory_space<vmem>>, vector<8x128xf32>,
    return
  }
  func.func @transform_0(%arg0: i32) -> (i32, i32) {
    %c0_i32 = arith.constant 0 : i32
    %c0_i32_0 = arith.constant 0 : i32
    return %arg0, %c0_i32 : i32, i32
  }
  func.func @transform_1(%arg0: i32) -> (i32, i32) {
    %c0_i32 = arith.constant 0 : i32
    %c0_i32_0 = arith.constant 0 : i32
    %c0_i32_1 = arith.constant 0 : i32
    return %c0_i32, %c0_i32_0 : i32, i32
  }
  func.func @transform_2(%arg0: i32) -> (i32, i32) {
    %c0_i32 = arith.constant 0 : i32
    %c0_i32_0 = arith.constant 0 : i32
    %c0_i32_1 = arith.constant 0 : i32
    return %c0_i32, %c0_i32_0 : i32, i32
  }
  func.func @transform_3(%arg0: i32) -> (i32, i32) {
    %c0_i32 = arith.constant 0 : i32
    %c0_i32_0 = arith.constant 0 : i32
    %c0_i32_1 = arith.constant 0 : i32
    return %c0_i32, %c0_i32_0 : i32, i32
  }
  func.func @transform_4(%arg0: i32) -> (i32, i32) {
    %c0_i32 = arith.constant 0 : i32
    %c0_i32_0 = arith.constant 0 : i32
    %c0_i32_1 = arith.constant 0 : i32
    return %c0_i32, %c0_i32_0 : i32, i32
  }
  func.func @transform_5(%arg0: i32) -> (i32, i32) {
    %c0_i32 = arith.constant 0 : i32
    %c0_i32_0 = arith.constant 0 : i32
    return %arg0, %c0_i32 : i32, i32
  }
}

</mosaic_0001>

<bundles_post_ra>
// kernel: tpu_custom_call.1
= control target key start
LH: loop header
LB: loop body
LE: loop exit
PB: predicated region body
PF: predicated region fallthrough
CT: control target
= control target key end

     0   :  { %10 = vsyncpa [#allocation3], 0  ;;  %s604_s0 = inlined_call_operand.hbm [shape: f32[8,128], index: 0, kind: input, shape index: {}]   ;;  %s605_s1 = inlined_call_operand.hbm [shape: bf16[128,128], index: 1, kind: input, shape index: {}]   ;;  %s606_s2 = inlined_call_operand.vmem [shape: f32[1,128], index: 2, kind: input, shape index: {}]   ;;  %s607_s3 = inlined_call_operand.hbm [shape: bf16[128,128], index: 3, kind: input, shape index: {}]   ;;  %s608_s4 = inlined_call_operand.vmem [shape: f32[1,128], index: 4, kind: input, shape index: {}]   ;;  %s609_s5 = inlined_call_operand.hbm [shape: f32[8,128], index: 5, kind: output, shape index: {}]  }
   0x1   :  { %11 = vsyncpa [#allocation6], 0 }
   0x2   :  { %12 = vsyncpa [#allocation4], 0  ;;  %s506_s18 = smov [#allocation5]   ;;  %s412_s22 = scalar_lea.hbm %s605_s1, 1024 }
   0x3   :  { %s28_s19 = sshll.u32 %s506_s18, 4  ;;  %p413_p0 = scmp.ne.s32.totalorder %s605_s1, %s412_s22  ;;  %s29_s19 = int_to_ptr.vmem [resolvable:$true] %s28_s19 }
   0x4   :  { %p416_p1 = scmp.lt.u32.totalorder %s412_s22, %s605_s1 }
   0x6   :  { %p418_p2 = pnand %p416_p1, %p413_p0 }
   0x8   :  { %421 = shalt.err (!%p418_p2)
}
   0x9   :  { %s422_s27 = scalar_lea.vmem %s29_s19, 1024  ;;  %p427_p4 = scmp.lt.s32.totalorder %s29_s19, %s29_s19 }
   0xa   :  { %p423_p3 = scmp.ne.s32.totalorder %s29_s19, %s422_s27  ;;  %p428_p5 = scmp.lt.s32.totalorder %s422_s27, %s422_s27 }
   0xc   :  { %p429_p6 = por %p428_p5, %p427_p4 }
   0xe   :  { %p430_p7 = pnand %p429_p6, %p423_p3 }
  0x10   :  { %433 = shalt.err (!%p430_p7)
}
  0x11   :  { %s507_s28 = smov 64   ;;  %s508_s29 = smov 4  }
  0x12   :  { %34 = dma.hbm_to_vmem [thread:$0]  %s605_s1, 1024, %s29_s19, [#allocation6], %s507_s28, %s507_s28, %s508_s29  }
  0x13   :  { %s509_s7 = smov [#allocation2]   ;;  %s510_s9 = smov [#allocation7]  }
  0x14   :  { %s19_s8 = sshll.u32 %s509_s7, 4  ;;  %s42_s10 = sshll.u32 %s510_s9, 4  ;;  %s20_s8 = int_to_ptr.vmem [resolvable:$true] %s19_s8  ;;  %s43_s10 = int_to_ptr.vmem [resolvable:$true] %s42_s10 }
  0x15   :  { %s434_s13 = scalar_lea.hbm %s604_s0, 128 }
  0x16   :  { %p435_p8 = scmp.ne.s32.totalorder %s604_s0, %s434_s13  ;;  %p438_p9 = scmp.lt.u32.totalorder %s434_s13, %s604_s0 }
  0x18   :  { %p440_p10 = pnand %p438_p9, %p435_p8 }
  0x1a   :  { %443 = shalt.err (!%p440_p10)
}
  0x1b   :  { %s444_s1 = scalar_lea.vmem %s20_s8, 128  ;;  %p449_p12 = scmp.lt.s32.totalorder %s20_s8, %s20_s8 }
  0x1c   :  { %p445_p11 = scmp.ne.s32.totalorder %s20_s8, %s444_s1  ;;  %p450_p13 = scmp.lt.s32.totalorder %s444_s1, %s444_s1 }
  0x1e   :  { %p451_p0 = por %p450_p13, %p449_p12 }
  0x20   :  { %p452_p1 = pnand %p451_p0, %p445_p11 }
  0x22   :  { %455 = shalt.err (!%p452_p1)
}
  0x23   :  { %22 = dma.hbm_to_vmem [thread:$0]  %s604_s0, 128, %s20_s8, [#allocation3]  }
  0x24   :  { %s456_s22 = scalar_lea.hbm %s607_s3, 1024 }
  0x25   :  { %p457_p2 = scmp.ne.s32.totalorder %s607_s3, %s456_s22  ;;  %p460_p3 = scmp.lt.u32.totalorder %s456_s22, %s607_s3 }
  0x27   :  { %p462_p4 = pnand %p460_p3, %p457_p2 }
  0x29   :  { %465 = shalt.err (!%p462_p4)
}
  0x2a   :  { %s466_s27 = scalar_lea.vmem %s43_s10, 1024  ;;  %p471_p6 = scmp.lt.s32.totalorder %s43_s10, %s43_s10 }
  0x2b   :  { %p467_p5 = scmp.ne.s32.totalorder %s43_s10, %s466_s27  ;;  %p472_p7 = scmp.lt.s32.totalorder %s466_s27, %s466_s27 }
  0x2d   :  { %p473_p8 = por %p472_p7, %p471_p6 }
  0x2f   :  { %p474_p9 = pnand %p473_p8, %p467_p5 }
  0x31   :  { %477 = shalt.err (!%p474_p9)
}
  0x32   :  { %48 = dma.hbm_to_vmem [thread:$0]  %s607_s3, 1024, %s43_s10, [#allocation6], %s507_s28, %s507_s28, %s508_s29  }
  0x33   :  { %500 = dma.done.wait [#allocation3], 128  }
  0x34   :  { %501 = vsyncadd [#allocation3], 4294967168 }
  0x35   :  { %502 = dma.done.wait [#allocation6], 2048  }
  0x36   :  { %503 = vsyncadd [#allocation6], 4294965248  ;;  %v511_v0 = vmov 0.0   ;;  %vm512_vm0 = vmmov 0   ;;  %v394_v1 = vld [vmem:[#allocation5] sm:$0xff]   ;;  %v395_v2 = vld [vmem:[#allocation5 + $0x8] sm:$0xff]  }
  0x37   :  { %346 = vmatprep.subr.bf16.mxu0 %v511_v0  ;;  %362 = vmatprep.mubr.msk.bf16.mxu0 %vm512_vm0, %v511_v0  ;;  %v396_v3 = vld [vmem:[#allocation5 + $0x10] sm:$0xff]   ;;  %v402_v4 = vld [vmem:[#allocation7] sm:$0xff]   ;;  %v397_v5 = vld [vmem:[#allocation5 + $0x18] sm:$0xff]   ;;  %s513_s7 = smov [#allocation8]  }
  0x38   :  { %366 = vmatprep.subr.bf16.mxu1 %v511_v0  ;;  %382 = vmatprep.mubr.msk.bf16.mxu1 %vm512_vm0, %v511_v0  ;;  %v403_v6 = vld [vmem:[#allocation7 + $0x8] sm:$0xff]   ;;  %v398_v7 = vld [vmem:[#allocation5 + $0x20] sm:$0xff]   ;;  %v404_v8 = vld [vmem:[#allocation7 + $0x10] sm:$0xff]   ;;  %s300_s8 = sshll.u32 %s513_s7, 4  ;;  %s301_s8 = int_to_ptr.vmem [resolvable:$true] %s300_s8 }
  0x39   :  { %347 = vmatpush3.bf16.msra.mxu0 %v394_v1  ;;  %367 = vmatpush3.bf16.msra.mxu1 %v402_v4  ;;  %v399_v9 = vld [vmem:[#allocation5 + $0x28] sm:$0xff]   ;;  %v400_v10 = vld [vmem:[#allocation5 + $0x30] sm:$0xff]   ;;  %v401_v11 = vld [vmem:[#allocation5 + $0x38] sm:$0xff]   ;;  %p483_p11 = scmp.lt.s32.totalorder %s301_s8, %s301_s8 }
  0x3a   :  { %348 = vmatprep.subr.bf16.mxu0 %v511_v0  ;;  %368 = vmatprep.subr.bf16.mxu1 %v511_v0  ;;  %v61_v12 = vld [vmem:[#allocation2] sm:$0xff]  ;;  %v406_v15 = vld [vmem:[#allocation7 + $0x20] sm:$0xff]   ;;  %v407_v16 = vld [vmem:[#allocation7 + $0x28] sm:$0xff]  }
  0x3b   :  { %v62_v13 = vpack.c.bf16 %v61_v12, %v61_v12  ;;  %v405_v14 = vld [vmem:[#allocation7 + $0x18] sm:$0xff]   ;;  %v408_v17 = vld [vmem:[#allocation7 + $0x30] sm:$0xff]  }
  0x3c   :  { %v409_v18 = vld [vmem:[#allocation7 + $0x38] sm:$0xff]  }
  0x3d   :  { %349 = vmatpush3.bf16.msra.mxu0 %v395_v2  ;;  %369 = vmatpush3.bf16.msra.mxu1 %v403_v6  ;;  %v318_v19 = vld [vmem:[%s606_s2] ss:$0 sm:$0xff]  ;;  %s478_s2 = scalar_lea.vmem %s301_s8, 128 }
  0x3e   :  { %350 = vmatprep.subr.bf16.mxu0 %v511_v0  ;;  %370 = vmatprep.subr.bf16.mxu1 %v511_v0  ;;  %v327_v31 = vld [vmem:[%s608_s4] ss:$0 sm:$0xff]  ;;  %p479_p10 = scmp.ne.s32.totalorder %s301_s8, %s478_s2  ;;  %p484_p12 = scmp.lt.s32.totalorder %s478_s2, %s478_s2 }
  0x40   :  { %p485_p13 = por %p484_p12, %p483_p11 }
  0x41   :  { %351 = vmatpush3.bf16.msra.mxu0 %v396_v3  ;;  %371 = vmatpush3.bf16.msra.mxu1 %v404_v8 }
  0x42   :  { %352 = vmatprep.subr.bf16.mxu0 %v511_v0  ;;  %372 = vmatprep.subr.bf16.mxu1 %v511_v0  ;;  %p486_p0 = pnand %p485_p13, %p479_p10 }
  0x45   :  { %353 = vmatpush3.bf16.msra.mxu0 %v397_v5  ;;  %373 = vmatpush3.bf16.msra.mxu1 %v405_v14 }
  0x46   :  { %354 = vmatprep.subr.bf16.mxu0 %v511_v0  ;;  %374 = vmatprep.subr.bf16.mxu1 %v511_v0 }
  0x49   :  { %355 = vmatpush3.bf16.msra.mxu0 %v398_v7  ;;  %375 = vmatpush3.bf16.msra.mxu1 %v406_v15 }
  0x4a   :  { %356 = vmatprep.subr.bf16.mxu0 %v511_v0  ;;  %376 = vmatprep.subr.bf16.mxu1 %v511_v0 }
  0x4d   :  { %357 = vmatpush3.bf16.msra.mxu0 %v399_v9  ;;  %377 = vmatpush3.bf16.msra.mxu1 %v407_v16 }
  0x4e   :  { %358 = vmatprep.subr.bf16.mxu0 %v511_v0  ;;  %378 = vmatprep.subr.bf16.mxu1 %v511_v0 }
  0x51   :  { %359 = vmatpush3.bf16.msra.mxu0 %v400_v10  ;;  %379 = vmatpush3.bf16.msra.mxu1 %v408_v17 }
  0x52   :  { %360 = vmatprep.subr.bf16.mxu0 %v511_v0  ;;  %380 = vmatprep.subr.bf16.mxu1 %v511_v0 }
  0x55   :  { %361 = vmatpush3.bf16.msra.mxu0 %v401_v11  ;;  %381 = vmatpush3.bf16.msra.mxu1 %v409_v18 }
  0x58   :  { %363 = vmatmul.mubr.bf16.vlgmr.msra.gmra.mrb[0].mxu0 %v62_v13 }
 0x12b   :  { %v162_v20 = vpop.f32.mrb[0].mxu0 }
 0x12c   :  { %v174_v21 = vadd.f32 %v318_v19, %v162_v20  ;;  %v364_v22 = vpop.f32.mrb[1].mxu0 }
 0x12d   :  { %v165_v23 = vpop.f32.mrb[2].mxu0 }
 0x12e   :  { %v176_v24 = vmul.f32 0.70710677, %v174_v21  ;;  %v365_v25 = vpop.f32.mrb[3].mxu0  ;;  %v175_v27 = vmul.f32 0.5, %v174_v21 }
 0x130   :  { %410 = verf.f32 %v176_v24 }
 0x13a   :  { %v411_v26 = vpop.eup %410 }
 0x13b   :  { %v178_v28 = vadd.f32 1.0, %v411_v26 }
 0x13d   :  { %v179_v29 = vmul.f32 %v178_v28, %v175_v27 }
 0x13f   :  { %v181_v30 = vpack.c.bf16 %v179_v29, %v179_v29 }
 0x141   :  { %383 = vmatmul.mubr.bf16.vlgmr.msra.gmra.mrb[0].mxu1 %v181_v30 }
 0x214   :  { %v280_v32 = vpop.f32.mrb[0].mxu1 }
 0x215   :  { %v292_v33 = vadd.f32 %v327_v31, %v280_v32  ;;  %v384_v34 = vpop.f32.mrb[1].mxu1 }
 0x216   :  { %v283_v35 = vpop.f32.mrb[2].mxu1 }
 0x217   :  { %293 = vst [vmem:[#allocation8] sm:$0xff] %v292_v33  ;;  %v385_v36 = vpop.f32.mrb[3].mxu1 }
 0x218   :  { %489 = shalt.err (!%p486_p0)
}
 0x219   :  { %s490_s4 = scalar_lea.hbm %s609_s5, 128 }
 0x21a   :  { %p491_p1 = scmp.ne.s32.totalorder %s609_s5, %s490_s4  ;;  %p494_p2 = scmp.lt.u32.totalorder %s490_s4, %s609_s5 }
 0x21c   :  { %p496_p3 = pnand %p494_p2, %p491_p1 }
 0x21e   :  { %499 = shalt.err (!%p496_p3)
}
 0x21f   :  { %303 = dma.vmem_to_hbm [thread:$0]  %s301_s8, 128, %s609_s5, [#allocation4]  }
 0x220   :  { %504 = dma.done.wait [#allocation4], 128  }
 0x221   :  { %505 = vsyncadd [#allocation4], 4294967168 }
 0x222   :  { %307 = vsyncpa [#allocation3], 1 }
 0x223   :  { %308 = vsyncpa [#allocation6], 1 }
 0x224   :  { %309 = vsyncpa [#allocation4], 1 }

// kernel: tpu_custom_call.1
= control target key start
LH: loop header
LB: loop body
LE: loop exit
PB: predicated region body
PF: predicated region fallthrough
CT: control target
= control target key end

     0   :  { %10 = vsyncpa [#allocation3], 0  ;;  %s604_s0 = inlined_call_operand.hbm [shape: f32[8,128], index: 0, kind: input, shape index: {}]   ;;  %s605_s1 = inlined_call_operand.hbm [shape: bf16[128,128], index: 1, kind: input, shape index: {}]   ;;  %s606_s2 = inlined_call_operand.vmem [shape: f32[1,128], index: 2, kind: input, shape index: {}]   ;;  %s607_s3 = inlined_call_operand.hbm [shape: bf16[128,128], index: 3, kind: input, shape index: {}]   ;;  %s608_s4 = inlined_call_operand.vmem [shape: f32[1,128], index: 4, kind: input, shape index: {}]   ;;  %s609_s5 = inlined_call_operand.hbm [shape: f32[8,128], index: 5, kind: output, shape index: {}]  }
   0x1   :  { %11 = vsyncpa [#allocation6], 0 }
   0x2   :  { %12 = vsyncpa [#allocation4], 0  ;;  %s506_s18 = smov [#allocation5]   ;;  %s412_s22 = scalar_lea.hbm %s605_s1, 1024 }
   0x3   :  { %s28_s19 = sshll.u32 %s506_s18, 4  ;;  %p413_p0 = scmp.ne.s32.totalorder %s605_s1, %s412_s22  ;;  %s29_s19 = int_to_ptr.vmem [resolvable:$true] %s28_s19 }
   0x4   :  { %p416_p1 = scmp.lt.u32.totalorder %s412_s22, %s605_s1 }
   0x6   :  { %p418_p2 = pnand %p416_p1, %p413_p0 }
   0x8   :  { %421 = shalt.err (!%p418_p2)
}
   0x9   :  { %s422_s27 = scalar_lea.vmem %s29_s19, 1024  ;;  %p427_p4 = scmp.lt.s32.totalorder %s29_s19, %s29_s19 }
   0xa   :  { %p423_p3 = scmp.ne.s32.totalorder %s29_s19, %s422_s27  ;;  %p428_p5 = scmp.lt.s32.totalorder %s422_s27, %s422_s27 }
   0xc   :  { %p429_p6 = por %p428_p5, %p427_p4 }
   0xe   :  { %p430_p7 = pnand %p429_p6, %p423_p3 }
  0x10   :  { %433 = shalt.err (!%p430_p7)
}
  0x11   :  { %s507_s28 = smov 64   ;;  %s508_s29 = smov 4  }
  0x12   :  { %34 = dma.hbm_to_vmem [thread:$0]  %s605_s1, 1024, %s29_s19, [#allocation6], %s507_s28, %s507_s28, %s508_s29  }
  0x13   :  { %s509_s7 = smov [#allocation2]   ;;  %s510_s9 = smov [#allocation7]  }
  0x14   :  { %s19_s8 = sshll.u32 %s509_s7, 4  ;;  %s42_s10 = sshll.u32 %s510_s9, 4  ;;  %s20_s8 = int_to_ptr.vmem [resolvable:$true] %s19_s8  ;;  %s43_s10 = int_to_ptr.vmem [resolvable:$true] %s42_s10 }
  0x15   :  { %s434_s13 = scalar_lea.hbm %s604_s0, 128 }
  0x16   :  { %p435_p8 = scmp.ne.s32.totalorder %s604_s0, %s434_s13  ;;  %p438_p9 = scmp.lt.u32.totalorder %s434_s13, %s604_s0 }
  0x18   :  { %p440_p10 = pnand %p438_p9, %p435_p8 }
  0x1a   :  { %443 = shalt.err (!%p440_p10)
}
  0x1b   :  { %s444_s1 = scalar_lea.vmem %s20_s8, 128  ;;  %p449_p12 = scmp.lt.s32.totalorder %s20_s8, %s20_s8 }
  0x1c   :  { %p445_p11 = scmp.ne.s32.totalorder %s20_s8, %s444_s1  ;;  %p450_p13 = scmp.lt.s32.totalorder %s444_s1, %s444_s1 }
  0x1e   :  { %p451_p0 = por %p450_p13, %p449_p12 }
  0x20   :  { %p452_p1 = pnand %p451_p0, %p445_p11 }
  0x22   :  { %455 = shalt.err (!%p452_p1)
}
  0x23   :  { %22 = dma.hbm_to_vmem [thread:$0]  %s604_s0, 128, %s20_s8, [#allocation3]  }
  0x24   :  { %s456_s22 = scalar_lea.hbm %s607_s3, 1024 }
  0x25   :  { %p457_p2 = scmp.ne.s32.totalorder %s607_s3, %s456_s22  ;;  %p460_p3 = scmp.lt.u32.totalorder %s456_s22, %s607_s3 }
  0x27   :  { %p462_p4 = pnand %p460_p3, %p457_p2 }
  0x29   :  { %465 = shalt.err (!%p462_p4)
}
  0x2a   :  { %s466_s27 = scalar_lea.vmem %s43_s10, 1024  ;;  %p471_p6 = scmp.lt.s32.totalorder %s43_s10, %s43_s10 }
  0x2b   :  { %p467_p5 = scmp.ne.s32.totalorder %s43_s10, %s466_s27  ;;  %p472_p7 = scmp.lt.s32.totalorder %s466_s27, %s466_s27 }
  0x2d   :  { %p473_p8 = por %p472_p7, %p471_p6 }
  0x2f   :  { %p474_p9 = pnand %p473_p8, %p467_p5 }
  0x31   :  { %477 = shalt.err (!%p474_p9)
}
  0x32   :  { %48 = dma.hbm_to_vmem [thread:$0]  %s607_s3, 1024, %s43_s10, [#allocation6], %s507_s28, %s507_s28, %s508_s29  }
  0x33   :  { %500 = dma.done.wait [#allocation3], 128  }
  0x34   :  { %501 = vsyncadd [#allocation3], 4294967168 }
  0x35   :  { %502 = dma.done.wait [#allocation6], 2048  }
  0x36   :  { %503 = vsyncadd [#allocation6], 4294965248  ;;  %v511_v0 = vmov 0.0   ;;  %vm512_vm0 = vmmov 0   ;;  %v394_v1 = vld [vmem:[#allocation5] sm:$0xff]   ;;  %v395_v2 = vld [vmem:[#allocation5 + $0x8] sm:$0xff]  }
  0x37   :  { %346 = vmatprep.subr.bf16.mxu0 %v511_v0  ;;  %362 = vmatprep.mubr.msk.bf16.mxu0 %vm512_vm0, %v511_v0  ;;  %v396_v3 = vld [vmem:[#allocation5 + $0x10] sm:$0xff]   ;;  %v402_v4 = vld [vmem:[#allocation7] sm:$0xff]   ;;  %v397_v5 = vld [vmem:[#allocation5 + $0x18] sm:$0xff]   ;;  %s513_s7 = smov [#allocation8]  }
  0x38   :  { %366 = vmatprep.subr.bf16.mxu1 %v511_v0  ;;  %382 = vmatprep.mubr.msk.bf16.mxu1 %vm512_vm0, %v511_v0  ;;  %v403_v6 = vld [vmem:[#allocation7 + $0x8] sm:$0xff]   ;;  %v398_v7 = vld [vmem:[#allocation5 + $0x20] sm:$0xff]   ;;  %v404_v8 = vld [vmem:[#allocation7 + $0x10] sm:$0xff]   ;;  %s300_s8 = sshll.u32 %s513_s7, 4  ;;  %s301_s8 = int_to_ptr.vmem [resolvable:$true] %s300_s8 }
  0x39   :  { %347 = vmatpush3.bf16.msra.mxu0 %v394_v1  ;;  %367 = vmatpush3.bf16.msra.mxu1 %v402_v4  ;;  %v399_v9 = vld [vmem:[#allocation5 + $0x28] sm:$0xff]   ;;  %v400_v10 = vld [vmem:[#allocation5 + $0x30] sm:$0xff]   ;;  %v401_v11 = vld [vmem:[#allocation5 + $0x38] sm:$0xff]   ;;  %p483_p11 = scmp.lt.s32.totalorder %s301_s8, %s301_s8 }
  0x3a   :  { %348 = vmatprep.subr.bf16.mxu0 %v511_v0  ;;  %368 = vmatprep.subr.bf16.mxu1 %v511_v0  ;;  %v61_v12 = vld [vmem:[#allocation2] sm:$0xff]  ;;  %v406_v15 = vld [vmem:[#allocation7 + $0x20] sm:$0xff]   ;;  %v407_v16 = vld [vmem:[#allocation7 + $0x28] sm:$0xff]  }
  0x3b   :  { %v62_v13 = vpack.c.bf16 %v61_v12, %v61_v12  ;;  %v405_v14 = vld [vmem:[#allocation7 + $0x18] sm:$0xff]   ;;  %v408_v17 = vld [vmem:[#allocation7 + $0x30] sm:$0xff]  }
  0x3c   :  { %v409_v18 = vld [vmem:[#allocation7 + $0x38] sm:$0xff]  }
  0x3d   :  { %349 = vmatpush3.bf16.msra.mxu0 %v395_v2  ;;  %369 = vmatpush3.bf16.msra.mxu1 %v403_v6  ;;  %v318_v19 = vld [vmem:[%s606_s2] ss:$0 sm:$0xff]  ;;  %s478_s2 = scalar_lea.vmem %s301_s8, 128 }
  0x3e   :  { %350 = vmatprep.subr.bf16.mxu0 %v511_v0  ;;  %370 = vmatprep.subr.bf16.mxu1 %v511_v0  ;;  %v327_v31 = vld [vmem:[%s608_s4] ss:$0 sm:$0xff]  ;;  %p479_p10 = scmp.ne.s32.totalorder %s301_s8, %s478_s2  ;;  %p484_p12 = scmp.lt.s32.totalorder %s478_s2, %s478_s2 }
  0x40   :  { %p485_p13 = por %p484_p12, %p483_p11 }
  0x41   :  { %351 = vmatpush3.bf16.msra.mxu0 %v396_v3  ;;  %371 = vmatpush3.bf16.msra.mxu1 %v404_v8 }
  0x42   :  { %352 = vmatprep.subr.bf16.mxu0 %v511_v0  ;;  %372 = vmatprep.subr.bf16.mxu1 %v511_v0  ;;  %p486_p0 = pnand %p485_p13, %p479_p10 }
  0x45   :  { %353 = vmatpush3.bf16.msra.mxu0 %v397_v5  ;;  %373 = vmatpush3.bf16.msra.mxu1 %v405_v14 }
  0x46   :  { %354 = vmatprep.subr.bf16.mxu0 %v511_v0  ;;  %374 = vmatprep.subr.bf16.mxu1 %v511_v0 }
  0x49   :  { %355 = vmatpush3.bf16.msra.mxu0 %v398_v7  ;;  %375 = vmatpush3.bf16.msra.mxu1 %v406_v15 }
  0x4a   :  { %356 = vmatprep.subr.bf16.mxu0 %v511_v0  ;;  %376 = vmatprep.subr.bf16.mxu1 %v511_v0 }
  0x4d   :  { %357 = vmatpush3.bf16.msra.mxu0 %v399_v9  ;;  %377 = vmatpush3.bf16.msra.mxu1 %v407_v16 }
  0x4e   :  { %358 = vmatprep.subr.bf16.mxu0 %v511_v0  ;;  %378 = vmatprep.subr.bf16.mxu1 %v511_v0 }
  0x51   :  { %359 = vmatpush3.bf16.msra.mxu0 %v400_v10  ;;  %379 = vmatpush3.bf16.msra.mxu1 %v408_v17 }
  0x52   :  { %360 = vmatprep.subr.bf16.mxu0 %v511_v0  ;;  %380 = vmatprep.subr.bf16.mxu1 %v511_v0 }
  0x55   :  { %361 = vmatpush3.bf16.msra.mxu0 %v401_v11  ;;  %381 = vmatpush3.bf16.msra.mxu1 %v409_v18 }
  0x58   :  { %363 = vmatmul.mubr.bf16.vlgmr.msra.gmra.mrb[0].mxu0 %v62_v13 }
 0x12b   :  { %v162_v20 = vpop.f32.mrb[0].mxu0 }
 0x12c   :  { %v174_v21 = vadd.f32 %v318_v19, %v162_v20  ;;  %v364_v22 = vpop.f32.mrb[1].mxu0 }
 0x12d   :  { %v165_v23 = vpop.f32.mrb[2].mxu0 }
 0x12e   :  { %v176_v24 = vmul.f32 0.70710677, %v174_v21  ;;  %v365_v25 = vpop.f32.mrb[3].mxu0  ;;  %v175_v27 = vmul.f32 0.5, %v174_v21 }
 0x130   :  { %410 = verf.f32 %v176_v24 }
 0x13a   :  { %v411_v26 = vpop.eup %410 }
 0x13b   :  { %v178_v28 = vadd.f32 1.0, %v411_v26 }
 0x13d   :  { %v179_v29 = vmul.f32 %v178_v28, %v175_v27 }
 0x13f   :  { %v181_v30 = vpack.c.bf16 %v179_v29, %v179_v29 }
 0x141   :  { %383 = vmatmul.mubr.bf16.vlgmr.msra.gmra.mrb[0].mxu1 %v181_v30 }
 0x214   :  { %v280_v32 = vpop.f32.mrb[0].mxu1 }
 0x215   :  { %v292_v33 = vadd.f32 %v327_v31, %v280_v32  ;;  %v384_v34 = vpop.f32.mrb[1].mxu1 }
 0x216   :  { %v283_v35 = vpop.f32.mrb[2].mxu1 }
 0x217   :  { %293 = vst [vmem:[#allocation8] sm:$0xff] %v292_v33  ;;  %v385_v36 = vpop.f32.mrb[3].mxu1 }
 0x218   :  { %489 = shalt.err (!%p486_p0)
}
 0x219   :  { %s490_s4 = scalar_lea.hbm %s609_s5, 128 }
 0x21a   :  { %p491_p1 = scmp.ne.s32.totalorder %s609_s5, %s490_s4  ;;  %p494_p2 = scmp.lt.u32.totalorder %s490_s4, %s609_s5 }
 0x21c   :  { %p496_p3 = pnand %p494_p2, %p491_p1 }
 0x21e   :  { %499 = shalt.err (!%p496_p3)
}
 0x21f   :  { %303 = dma.vmem_to_hbm [thread:$0]  %s301_s8, 128, %s609_s5, [#allocation4]  }
 0x220   :  { %504 = dma.done.wait [#allocation4], 128  }
 0x221   :  { %505 = vsyncadd [#allocation4], 4294967168 }
 0x222   :  { %307 = vsyncpa [#allocation3], 1 }
 0x223   :  { %308 = vsyncpa [#allocation6], 1 }
 0x224   :  { %309 = vsyncpa [#allocation4], 1 }

</bundles_post_ra>
